<compile_context>
chip_gen: v5e
topology: v5e:2x2
jax: 0.10.0
libtpu: 0.0.40
codegen_flags: <defaults>
</compile_context>

<pallas_src>
import functools

import jax
import jax.numpy as jnp
from jax import lax
from jax.experimental import pallas as pl
from jax.experimental.pallas import tpu as pltpu


def _choose_row_tile(n, c, itemsize, target_tile_bytes=2 * 1024 * 1024, min_tiles=8):
    """Row tile sized for VMEM (input tile + fused f32 intermediates) AND split
    into >= min_tiles grid steps so the pipeline overlaps and both v7x TCs work."""
    # Sublane-packing multiple: 8 for 4-byte, 16 for 2-byte, 32 for 1-byte dtypes.
    mult = max(8, 32 // max(1, itemsize))
    if n <= 2 * mult:
        return n                                   # too small to split usefully
    rows_budget = max(mult, target_tile_bytes // max(1, c * itemsize))
    rows_split = max(mult, pl.cdiv(n, min_tiles))  # keep >= min_tiles tiles
    rows = min(rows_budget, rows_split, 1024)
    rows = max(mult, (rows // mult) * mult)
    # TODO(synk): for very large C (vocab >= ~16-32k) where even `mult` rows x C
    # overflows the VMEM budget, add a second grid axis over class chunks with an
    # online-softmax carry (running m, sum-exp, target numerator).
    return min(rows, n)


def _needs_f32_passes(dtype):
    """bf16 max/select passes are a win on v6e/v7x (native bf16 VALU) but not on
    v5e; upcast there. Best-effort trace-time detection, never raises."""
    if jnp.dtype(dtype).itemsize >= 4:
        return False
    try:
        info = pltpu.get_tpu_info()
        tag = str(getattr(info, "chip_version", info)).lower()
        return "v5" in tag
    except Exception:
        return False


def _polyloss_kernel(logits_ref, targets_ref, partial_ref, *,
                     n_rows, row_tile, upcast_passes):
    i = pl.program_id(0)
    xb = logits_ref[...]                                     # [TN, C] native dtype
    t = targets_ref[...]                                     # [TN, 1] int32
    tn, c = xb.shape

    # Pass dtype: native (bf16/f32) on v6e/v7x, f32 on v5e. max/select on bf16
    # values are exact, so this only changes speed, not results.
    xp = xb.astype(jnp.float32) if upcast_passes else xb

    # Pass 1: row max (stable log-sum-exp pivot). Exact in any dtype.
    m = jnp.max(xp, axis=1, keepdims=True)                   # [TN, 1]

    # Pass 2: target logit via one compare+select (no materialized f32 one-hot).
    iota_c = lax.broadcasted_iota(jnp.int32, (tn, c), 1)
    x_t = jnp.sum(jnp.where(iota_c == t, xp, 0.0), axis=1, keepdims=True)

    # Pass 3: sum-exp. The f32 upcast is fused into this pass; the subtraction is
    # done in f32 so bf16 inputs lose no precision in the exponent.
    m32 = m.astype(jnp.float32)
    x_t32 = x_t.astype(jnp.float32)
    e = jnp.exp(xb.astype(jnp.float32) - m32)                # [TN, C] f32 (fused)
    se = jnp.sum(e, axis=1, keepdims=True)                   # [TN, 1]

    ce_i = (m32 - x_t32) + jnp.log(se)                       # per-row cross entropy
    p_t = jnp.exp(x_t32 - m32) / se                          # softmax prob of target

    # Ragged last tile: SELECT-mask per-row scalars only (cheap, [TN,1]); stale
    # VMEM NaN/Inf in out-of-range rows is discarded by the select.
    row_ids = i * row_tile + lax.broadcasted_iota(jnp.int32, (tn, 1), 0)
    valid = row_ids < n_rows
    ce_sum = jnp.sum(jnp.where(valid, ce_i, 0.0))            # scalar partial
    pt_sum = jnp.sum(jnp.where(valid, p_t, 0.0))             # scalar partial

    # Lane-dense partial-sum slab: lane 0 = ce_sum, lane 1 = pt_sum, rest 0.
    lane = lax.broadcasted_iota(jnp.int32, partial_ref.shape, 2)
    partial_ref[...] = jnp.where(lane == 0, ce_sum,
                                 jnp.where(lane == 1, pt_sum, 0.0))


def poly_loss(outputs, targets, epsilon=2.0, row_tile=None):
    """outputs: [N, C] float logits (f32 or bf16); targets: [N] int labels.

    Returns the scalar PolyLoss: mean(CE + epsilon * (1 - p_target)).
    """
    n, c = outputs.shape
    itemsize = jnp.dtype(outputs.dtype).itemsize
    tn = row_tile if row_tile is not None else _choose_row_tile(n, c, itemsize)
    tn = min(tn, n)
    grid_n = pl.cdiv(n, tn)

    targets_2d = targets.astype(jnp.int32).reshape(n, 1)
    kernel = functools.partial(
        _polyloss_kernel,
        n_rows=n,
        row_tile=tn,
        upcast_passes=_needs_f32_passes(outputs.dtype),
    )

    cost = pl.CostEstimate(
        flops=8 * n * c,
        transcendentals=n * c,
        bytes_accessed=n * c * itemsize + n * 4 + grid_n * 128 * 4,
    )

    partials = pl.pallas_call(
        kernel,
        out_shape=jax.ShapeDtypeStruct((grid_n, 1, 128), jnp.float32),
        grid_spec=pltpu.PrefetchScalarGridSpec(
            num_scalar_prefetch=0,
            grid=(grid_n,),
            in_specs=[
                pl.BlockSpec((tn, c), lambda i: (i, 0)),   # streamed logits tile
                pl.BlockSpec((tn, 1), lambda i: (i, 0)),   # matching labels tile
            ],
            out_specs=pl.BlockSpec((1, 1, 128), lambda i: (i, 0, 0)),
        ),
        compiler_params=pltpu.CompilerParams(
            dimension_semantics=("parallel",),             # shard tiles across TCs
            vmem_limit_bytes=32 * 1024 * 1024,             # covers v5e's 16 MiB default
        ),
        cost_estimate=cost,
    )(outputs, targets_2d)

    # Tiny final reduction + epsilon combine in plain JAX (keeps accumulators f32
    # and keeps epsilon out of the kernel closure).
    ce_sum = jnp.sum(partials[:, 0, 0])
    pt_sum = jnp.sum(partials[:, 0, 1])
    inv_n = 1.0 / jnp.float32(n)
    ce = ce_sum * inv_n
    mean_pt = pt_sum * inv_n
    # mean(ce + eps*(1 - p_t_i)) == ce + eps*(1 - mean(p_t)) since ce is scalar.
    return ce + jnp.float32(epsilon) * (1.0 - mean_pt)


def _poly_loss_ref(outputs, targets, epsilon=2.0):
    # Pure-JAX reference mirroring the PyTorch forward.
    logits = outputs.astype(jnp.float32)
    logp = jax.nn.log_softmax(logits, axis=1)
    onehot = jax.nn.one_hot(targets, outputs.shape[1], dtype=jnp.float32)
    ce = -jnp.mean(jnp.sum(onehot * logp, axis=1))
    pt = jnp.sum(onehot * jax.nn.softmax(logits, axis=1), axis=1)
    return jnp.mean(ce + epsilon * (1.0 - pt))


if __name__ == "__main__":
    key = jax.random.PRNGKey(0)
    k1, k2, k3, k4, k5, k6 = jax.random.split(key, 6)

    # Small shape consistent with a ViT classification head: [batch, num_classes].
    N, C = 8, 16
    logits = jax.random.normal(k1, (N, C), dtype=jnp.float32)
    targets = jax.random.randint(k2, (N,), 0, C, dtype=jnp.int32)

    loss = jax.block_until_ready(poly_loss(logits, targets))
    ref = _poly_loss_ref(logits, targets)
    assert jnp.allclose(loss, ref, atol=1e-5, rtol=1e-5), (loss, ref)

    # Multi-tile path with a ragged last tile (N % TN != 0) and bf16 logits
    # streamed straight from HBM.
    N2, C2 = 37, 24
    logits2 = jax.random.normal(k3, (N2, C2), dtype=jnp.float32).astype(jnp.bfloat16)
    targets2 = jax.random.randint(k4, (N2,), 0, C2, dtype=jnp.int32)

    loss2 = jax.block_until_ready(poly_loss(logits2, targets2, row_tile=16))
    ref2 = _poly_loss_ref(logits2.astype(jnp.float32), targets2)
    assert jnp.allclose(loss2, ref2, atol=1e-4, rtol=1e-4), (loss2, ref2)

    # Automatic tiling path: enough rows that the chooser splits into several
    # tiles (pipelined, parallel grid axis) without being told a row_tile.
    N3, C3 = 200, 40
    logits3 = jax.random.normal(k5, (N3, C3), dtype=jnp.float32)
    targets3 = jax.random.randint(k6, (N3,), 0, C3, dtype=jnp.int32)

    loss3 = jax.block_until_ready(poly_loss(logits3, targets3, epsilon=1.0))
    ref3 = _poly_loss_ref(logits3, targets3, epsilon=1.0)
    assert jnp.allclose(loss3, ref3, atol=1e-5, rtol=1e-5), (loss3, ref3)

    print("KERNEL_OK")
</pallas_src>

<mosaic_0001>
module attributes {stable_mosaic.version = 11 : i64} {
  func.func @_polyloss_kernel(%arg0: i32, %arg1: memref<8x16xf32, #tpu.memory_space<vmem>>, %arg2: memref<8x1xi32, #tpu.memory_space<vmem>>, %arg3: memref<1x1x128xf32, #tpu.memory_space<vmem>>) attributes {dimension_semantics = [#tpu.dimension_semantics<parallel>], iteration_bounds = array<i64: 1>, scalar_prefetch = 0 : i64, scratch_operands = 0 : i64, tpu.core_type = #tpu.core_type<tc>, window_params = [{transform_indices = @transform_0, window_bounds = array<i64: 8, 16>}, {transform_indices = @transform_1, window_bounds = array<i64: 8, 1>}, {transform_indices = @transform_2, window_bounds = array<i64: 1, 1, 128>}]} {
    %c0 = arith.constant 0 : index
    %c0_0 = arith.constant 0 : index
    %0 = vector.load %arg1[%c0, %c0_0] : memref<8x16xf32, #tpu.memory_space<vmem>>, vector<8x16xf32>
    %c0_1 = arith.constant 0 : index
    %c0_2 = arith.constant 0 : index
    %1 = vector.load %arg2[%c0_1, %c0_2] : memref<8x1xi32, #tpu.memory_space<vmem>>, vector<8x1xi32>
    %cst = arith.constant dense<0xFF800000> : vector<8xf32>
    %2 = vector.multi_reduction <maximumf>, %0, %cst [1] : vector<8x16xf32> to vector<8xf32>
    %3 = vector.shape_cast %2 : vector<8xf32> to vector<8x1xf32>
    %4 = tpu.iota {dimensions = array<i32: 1>} : vector<8x16xi32>
    %5 = vector.broadcast %1 : vector<8x1xi32> to vector<8x16xi32>
    %6 = arith.cmpi eq, %4, %5 : vector<8x16xi32>
    %cst_3 = arith.constant 0.000000e+00 : f32
    %7 = vector.broadcast %cst_3 : f32 to vector<8x16xf32>
    %8 = arith.select %6, %0, %7 : vector<8x16xi1>, vector<8x16xf32>
    %cst_4 = arith.constant dense<0.000000e+00> : vector<8xf32>
    %9 = vector.multi_reduction <add>, %8, %cst_4 [1] : vector<8x16xf32> to vector<8xf32>
    %10 = vector.shape_cast %9 : vector<8xf32> to vector<8x1xf32>
    %11 = vector.broadcast %3 : vector<8x1xf32> to vector<8x16xf32>
    %12 = arith.subf %0, %11 : vector<8x16xf32>
    %13 = math.exp %12 : vector<8x16xf32>
    %cst_5 = arith.constant dense<0.000000e+00> : vector<8xf32>
    %14 = vector.multi_reduction <add>, %13, %cst_5 [1] : vector<8x16xf32> to vector<8xf32>
    %15 = vector.shape_cast %14 : vector<8xf32> to vector<8x1xf32>
    %16 = arith.subf %3, %10 : vector<8x1xf32>
    %17 = math.log %15 : vector<8x1xf32>
    %18 = arith.addf %16, %17 : vector<8x1xf32>
    %19 = arith.subf %10, %3 : vector<8x1xf32>
    %20 = math.exp %19 : vector<8x1xf32>
    %21 = arith.divf %20, %15 : vector<8x1xf32>
    %c8_i32 = arith.constant 8 : i32
    %22 = arith.muli %arg0, %c8_i32 : i32
    %23 = tpu.iota {dimensions = array<i32: 0>} : vector<8x1xi32>
    %24 = vector.broadcast %22 : i32 to vector<8x1xi32>
    %25 = arith.addi %24, %23 : vector<8x1xi32>
    %c8_i32_6 = arith.constant 8 : i32
    %26 = vector.broadcast %c8_i32_6 : i32 to vector<8x1xi32>
    %27 = arith.cmpi slt, %25, %26 : vector<8x1xi32>
    %cst_7 = arith.constant 0.000000e+00 : f32
    %28 = vector.broadcast %cst_7 : f32 to vector<8x1xf32>
    %29 = arith.select %27, %18, %28 : vector<8x1xi1>, vector<8x1xf32>
    %30 = vector.shape_cast %29 : vector<8x1xf32> to vector<1x8x1xf32>
    %cst_8 = arith.constant dense<0.000000e+00> : vector<1xf32>
    %31 = vector.multi_reduction <add>, %30, %cst_8 [1, 2] : vector<1x8x1xf32> to vector<1xf32>
    %32 = vector.shape_cast %31 : vector<1xf32> to vector<1x1x1xf32>
    %33 = vector.extract %32[0, 0, 0] : f32 from vector<1x1x1xf32>
    %cst_9 = arith.constant 0.000000e+00 : f32
    %34 = vector.broadcast %cst_9 : f32 to vector<8x1xf32>
    %35 = arith.select %27, %21, %34 : vector<8x1xi1>, vector<8x1xf32>
    %36 = vector.shape_cast %35 : vector<8x1xf32> to vector<1x8x1xf32>
    %cst_10 = arith.constant dense<0.000000e+00> : vector<1xf32>
    %37 = vector.multi_reduction <add>, %36, %cst_10 [1, 2] : vector<1x8x1xf32> to vector<1xf32>
    %38 = vector.shape_cast %37 : vector<1xf32> to vector<1x1x1xf32>
    %39 = vector.extract %38[0, 0, 0] : f32 from vector<1x1x1xf32>
    %40 = tpu.iota {dimensions = array<i32: 2>} : vector<1x1x128xi32>
    %c0_i32 = arith.constant 0 : i32
    %41 = vector.broadcast %c0_i32 : i32 to vector<1x1x128xi32>
    %42 = arith.cmpi eq, %40, %41 : vector<1x1x128xi32>
    %c1_i32 = arith.constant 1 : i32
    %43 = vector.broadcast %c1_i32 : i32 to vector<1x1x128xi32>
    %44 = arith.cmpi eq, %40, %43 : vector<1x1x128xi32>
    %cst_11 = arith.constant 0.000000e+00 : f32
    %45 = vector.broadcast %39 : f32 to vector<1x1x128xf32>
    %46 = vector.broadcast %cst_11 : f32 to vector<1x1x128xf32>
    %47 = arith.select %44, %45, %46 : vector<1x1x128xi1>, vector<1x1x128xf32>
    %48 = vector.broadcast %33 : f32 to vector<1x1x128xf32>
    %49 = arith.select %42, %48, %47 : vector<1x1x128xi1>, vector<1x1x128xf32>
    %c0_12 = arith.constant 0 : index
    %c0_13 = arith.constant 0 : index
    %c0_14 = arith.constant 0 : index
    %50 = vector.load %arg3[%c0_12, %c0_13, %c0_14] : memref<1x1x128xf32, #tpu.memory_space<vmem>>, vector<1x1x128xf32>
    tpu.vector_store %arg3[%c0_12, %c0_13, %c0_14], %49 {strides = array<i32>} : memref<1x1x128xf32, #tpu.memory_space<vmem>>, vector<1x1x128xf32>,
    return
  }
  func.func @transform_0(%arg0: i32) -> (i32, i32) {
    %c0_i32 = arith.constant 0 : i32
    %c0_i32_0 = arith.constant 0 : i32
    return %arg0, %c0_i32 : i32, i32
  }
  func.func @transform_1(%arg0: i32) -> (i32, i32) {
    %c0_i32 = arith.constant 0 : i32
    %c0_i32_0 = arith.constant 0 : i32
    return %arg0, %c0_i32 : i32, i32
  }
  func.func @transform_2(%arg0: i32) -> (i32, i32, i32) {
    %c0_i32 = arith.constant 0 : i32
    %c0_i32_0 = arith.constant 0 : i32
    %c0_i32_1 = arith.constant 0 : i32
    return %arg0, %c0_i32, %c0_i32_0 : i32, i32, i32
  }
}

</mosaic_0001>

<bundles_post_ra>
// kernel: tpu_custom_call.1
= control target key start
LH: loop header
LB: loop body
LE: loop exit
PB: predicated region body
PF: predicated region fallthrough
CT: control target
= control target key end

     0   :  { %vm14_vm0 = vcmask 130048   ;;  %s185_s0 = inlined_call_operand.vmem [shape: f32[8,16], index: 0, kind: input, shape index: {}]   ;;  %s186_s1 = inlined_call_operand.vmem [shape: s32[8,1], index: 1, kind: input, shape index: {}]   ;;  %s187_s2 = inlined_call_operand.hbm [shape: f32[1,1,128], index: 2, kind: output, shape index: {}]  }
   0x1   :  { %v12_v0 = vld [vmem:[%s185_s0] sm:$0xff] }
   0x2   :  { %7 = vsyncpa [#allocation3], 0  ;;  %v15_v1 = vsel %vm14_vm0, %v12_v0, -inf  ;;  %v149_v2 = vmov 0   ;;  %v13_v3 = vld [vmem:[%s186_s1] sm:$0xff]  ;;  %v18_v9 = vlaneseq  ;;  %vm63_vm2 = vcmask 7168  }
   0x3   :  { %114 = vset.pattern.permute.xlu0 %v149_v2  ;;  %s150_s0 = smov [#allocation2]   ;;  %s99_s16 = sshll.u32 %s187_s2, 4  ;;  %s100_s16 = int_to_ptr.hbm [resolvable:$true] %s99_s16 }
   0x4   :  { %16 = vmax.xlane.f32.xlu0 %v15_v1  ;;  %v174_v10 = vand.u32 127, %v18_v9  ;;  %s97_s1 = sshll.u32 %s150_s0, 4  ;;  %s98_s1 = int_to_ptr.vmem [resolvable:$true] %s97_s1 }
   0x6   :  { %vm86_vm7 = vcmp.eq.s32.totalorder %v174_v10, 1  ;;  %vm85_vm8 = vcmp.eq.s32.totalorder %v174_v10, 0 }
  0x18   :  { %21 = vperm.xlu0 %114, %v13_v3  }
  0x77   :  { %v17_v4 = vpop.xlane.xlu0 %16 }
  0x78   :  { %v28_v5 = vsub.f32 %v12_v0, %v17_v4 }
  0x7a   :  { %v29_v6 = vmul.f32 1.442695, %v28_v5 }
  0x7c   :  { %115 = vpow2.f32 %v29_v6 }
  0x82   :  { %v116_v7 = vpop.eup %115 }
  0x83   :  { %v31_v8 = vsel %vm14_vm0, %v116_v7, 0.0 }
  0x84   :  { %32 = vadd.xlane.f32.xlu1 %v31_v8 }
  0x8a   :  { %v22_v11 = vpop.permute.xlu0 %21 }
  0x8b   :  { %vm23_vm1 = vcmp.eq.s32.totalorder %v174_v10, %v22_v11 }
  0x8c   :  { %v24_v12 = vsel %vm23_vm1, %v12_v0, 0.0 }
  0x8d   :  { %v25_v13 = vsel %vm14_vm0, %v24_v12, 0.0 }
  0x8e   :  { %26 = vadd.xlane.f32.xlu1 %v25_v13 }
  0xf7   :  { %v33_v14 = vpop.xlane.xlu1 %32 }
  0xf8   :  { %117 = vrcp.f32 %v33_v14  ;;  %v52_v28 = vand.u32 2147483648, %v33_v14  ;;  %vm46_vm4 = vweird.f32 %v33_v14  ;;  %v50_v29 = vand.u32 2147483647, %v33_v14 }
  0xf9   :  { %119 = vlog2.f32 %v33_v14 }
  0xfa   :  { %v53_v31 = vor.u32 1.1754944e-38, %v52_v28  ;;  %vm51_vm6 = vcmp.eq.f32.partialorder %v50_v29, 8.507059e+37 }
  0xfe   :  { %v118_v15 = vpop.eup %117 }
  0xff   :  { %v120_v16 = vpop.eup %119  ;;  %v42_v17 = vmul.f32 %v118_v15, %v33_v14  ;;  %vm47_vm3 = vweird.f32 %v118_v15 }
 0x100   :  { %v36_v22 = vmul.f32 0.6931472, %v120_v16  ;;  %vm48_vm5 = vmor %vm46_vm4, %vm47_vm3 }
 0x101   :  { %v43_v18 = vsub.f32 1.0, %v42_v17  ;;  %v27_v19 = vpop.xlane.xlu1 %26 }
 0x102   :  { %v34_v20 = vsub.f32 %v17_v4, %v27_v19  ;;  %v38_v21 = vsub.f32 %v27_v19, %v17_v4 }
 0x103   :  { %v44_v23 = vmul.f32 %v118_v15, %v43_v18 }
 0x104   :  { %v39_v24 = vmul.f32 1.442695, %v38_v21  ;;  %v37_v25 = vadd.f32 %v36_v22, %v34_v20 }
 0x105   :  { %v45_v26 = vadd.f32 %v118_v15, %v44_v23 }
 0x106   :  { %121 = vpow2.f32 %v39_v24  ;;  %v64_v27 = vsel %vm63_vm2, %v37_v25, 0.0 }
 0x107   :  { %65 = vadd.xlane.f32.xlu2 %v64_v27  ;;  %v49_v30 = vsel %vm48_vm5, %v118_v15, %v45_v26 }
 0x108   :  { %v54_v33 = vsel %vm51_vm6, %v53_v31, %v49_v30 }
 0x10c   :  { %v122_v32 = vpop.eup %121 }
 0x10d   :  { %v55_v34 = vmul.f32 %v122_v32, %v54_v33 }
 0x10f   :  { %v75_v35 = vsel %vm63_vm2, %v55_v34, 0.0 }
 0x110   :  { %76 = vadd.xlane.f32.xlu2 %v75_v35 }
 0x17a   :  { %v66_v36 = vpop.xlane.xlu2 %65 }
 0x17b   :  { %v67_v37 = vrot.slane %v66_v36, 4 }
 0x17d   :  { %v68_v38 = vadd.f32 %v67_v37, %v66_v36 }
 0x17f   :  { %v69_v39 = vrot.slane %v68_v38, 2 }
 0x181   :  { %v70_v40 = vadd.f32 %v69_v39, %v68_v38 }
 0x183   :  { %v77_v41 = vpop.xlane.xlu2 %76  ;;  %v71_v42 = vrot.slane %v70_v40, 1 }
 0x184   :  { %v78_v43 = vrot.slane %v77_v41, 4 }
 0x185   :  { %v72_v44 = vadd.f32 %v71_v42, %v70_v40 }
 0x186   :  { %v79_v45 = vadd.f32 %v78_v43, %v77_v41 }
 0x187   :  { %108 = vpush %v72_v44 }
 0x188   :  { %v80_v46 = vrot.slane %v79_v45, 2 }
 0x18a   :  { %v81_v47 = vadd.f32 %v80_v46, %v79_v45 }
 0x18c   :  { %v82_v48 = vrot.slane %v81_v47, 1 }
 0x18e   :  { %v83_v49 = vadd.f32 %v82_v48, %v81_v47 }
 0x190   :  { %110 = vpush %v83_v49 }
 0x1b8   :  { %s109_s13 = spop %108 }
 0x1b9   :  { %v89_v51 = vstv %s109_s13 }
 0x1c1   :  { %s111_s17 = spop %110 }
 0x1c2   :  { %v87_v50 = vstv %s111_s17 }
 0x1c3   :  { %v88_v52 = vsel %vm86_vm7, %v87_v50, 0.0 }
 0x1c4   :  { %v90_v53 = vsel %vm85_vm8, %v89_v51, %v88_v52 }
 0x1c5   :  { %91 = vst [vmem:[#allocation2] sm:$0x1] %v90_v53 }
 0x1c6   :  { %102 = dma.vmem_to_hbm [thread:$0]  %s98_s1, 16, %s100_s16, [#allocation3]  }
 0x1c7   :  { %147 = dma.done.wait [#allocation3], 16  }
 0x1c8   :  { %148 = vsyncadd [#allocation3], 4294967280 }
 0x1c9   :  { %107 = vsyncpa [#allocation3], 1 }

</bundles_post_ra>
